<compile_context>
chip_gen: v6e
topology: v6e:2x2x1
jax: 0.10.0
libtpu: 0.0.40
codegen_flags: <defaults>
</compile_context>

<pallas_src>
import functools
import math

import jax
import jax.numpy as jnp
from jax.experimental import pallas as pl
from jax.experimental.pallas import tpu as pltpu

EPS = 1e-9
MAX_LANES = 128
MAX_TILE_BYTES = 4 * 1024 * 1024      # per input per pipeline buffer
SUB_ROWS = 512                        # rows per in-kernel compute sub-chunk


def _device_kind():
    try:
        return jax.devices()[0].device_kind.lower()
    except Exception:
        return ""


def _num_tensorcores(kind):
    # Megacore chips (2 TensorCores): v4, v5p, v7x.  v5e / v6e have 1 TC.
    if ("v7" in kind) or ("v5p" in kind) or ("v4" in kind):
        return 2
    return 1


def _vmem_limit_bytes(kind):
    if "v7" in kind:
        return 48 * 1024 * 1024       # v7x: 64 MiB physical per TC -> stay well under
    return 64 * 1024 * 1024           # v5e / v6e: 128 MiB physical


def _wcce_partial_kernel(pred_ref, true_ref, acc_ref, *, tile_rows, lw, sub_rows):
    """Accumulates per-core vector partial sums across the 'arbitrary' grid axis.

    acc block layout (1, 2, 8, lw):
      acc[0, 0] : partial sum of true
      acc[0, 1] : partial sum of true * log(pred + eps)
    """
    i = pl.program_id(1)              # "arbitrary" reduction axis

    @pl.when(i == 0)
    def _init():
        acc_ref[...] = jnp.zeros_like(acc_ref)

    nsub = tile_rows // sub_rows

    def body(s, carry):
        t_acc, x_acc = carry
        r0 = pl.multiple_of(s * sub_rows, sub_rows)
        t = true_ref[pl.ds(r0, sub_rows), :].astype(jnp.float32)
        p = pred_ref[pl.ds(r0, sub_rows), :].astype(jnp.float32)
        tl = t * jnp.log(p + EPS)
        # (sub_rows, lw) -> (sub_rows//8, 8, lw); summing the leading axis is pure
        # VALU vreg adds.  Cross-lane reduction is deferred to the JAX glue.
        t_acc = t_acc + t.reshape(sub_rows // 8, 8, lw).sum(axis=0)
        x_acc = x_acc + tl.reshape(sub_rows // 8, 8, lw).sum(axis=0)
        return t_acc, x_acc

    zero = jnp.zeros((8, lw), jnp.float32)
    t_acc, x_acc = jax.lax.fori_loop(0, nsub, body, (zero, zero))
    acc_ref[0, 0, :, :] += t_acc
    acc_ref[0, 1, :, :] += x_acc


def _jax_partial_sums(t_flat, p_flat):
    t = t_flat.astype(jnp.float32)
    p = p_flat.astype(jnp.float32)
    return jnp.sum(t), jnp.sum(t * jnp.log(p + EPS))


def weighted_categorical_cross_entropy(pred, true):
    """pred, true: (B, C, D, H, W) float volumes (float32 or bfloat16)."""
    assert pred.shape == true.shape
    B, C, D, H, W = pred.shape
    n_mean = B * D * H * W   # mean is over the (B, D, H, W) output of the PyTorch module

    total = int(pred.size)
    kind = _device_kind()
    ncores = _num_tensorcores(kind)

    # Copy-free contiguous 2-D view of the whole volume: lane width = gcd(total, 128).
    # (128 in the common case; still copy-free when total is not a multiple of 128.)
    lw = math.gcd(total, MAX_LANES) if total > 0 else 0
    rows = total // lw if lw else 0

    itemsize = jnp.dtype(pred.dtype).itemsize
    tile_rows = 0
    if lw >= 8:
        row_bytes = lw * itemsize
        tile_cap = max(16, (MAX_TILE_BYTES // row_bytes) // 16 * 16)
        tile_rows = min(tile_cap, (rows // ncores) // 16 * 16)

    if tile_rows >= 16:
        sub_rows = min(SUB_ROWS, tile_rows)
        tile_rows = (tile_rows // sub_rows) * sub_rows      # multiple of sub_rows
        steps = rows // (ncores * tile_rows)
        rows_kernel = ncores * steps * tile_rows            # rows covered by the kernel

        p2 = pred.reshape(rows, lw)   # contiguous row-major reshape: no HBM copy
        t2 = true.reshape(rows, lw)

        # Contiguous per-core chunks: core c owns blocks [c*steps, (c+1)*steps).
        in_map = lambda c, i: (c * steps + i, 0)

        kernel = functools.partial(
            _wcce_partial_kernel, tile_rows=tile_rows, lw=lw, sub_rows=sub_rows)

        partials = pl.pallas_call(
            kernel,
            out_shape=jax.ShapeDtypeStruct((ncores, 2, 8, lw), jnp.float32),
            grid=(ncores, steps),
            in_specs=[
                pl.BlockSpec((tile_rows, lw), in_map),
                pl.BlockSpec((tile_rows, lw), in_map),
            ],
            out_specs=pl.BlockSpec((1, 2, 8, lw), lambda c, i: (c, 0, 0, 0)),
            compiler_params=pltpu.CompilerParams(
                dimension_semantics=("parallel", "arbitrary"),
                vmem_limit_bytes=_vmem_limit_bytes(kind)),
            cost_estimate=pl.CostEstimate(
                flops=3 * rows_kernel * lw,
                transcendentals=rows_kernel * lw,
                bytes_accessed=2 * rows_kernel * lw * itemsize),
        )(p2, t2)

        s_true = jnp.sum(partials[:, 0])
        s_xent = jnp.sum(partials[:, 1])

        tail_start = rows_kernel * lw
        if tail_start < total:
            # Ragged remainder (< ncores*tile_rows rows): tiny; only the tail is
            # sliced/copied, never the bulk of the arrays.
            tt = jax.lax.slice(true.reshape(-1), (tail_start,), (total,))
            tp = jax.lax.slice(pred.reshape(-1), (tail_start,), (total,))
            d_true, d_xent = _jax_partial_sums(tt, tp)
            s_true = s_true + d_true
            s_xent = s_xent + d_xent
    else:
        # Degenerate tiny / badly-factored input: plain JAX (tiling would be all padding).
        s_true, s_xent = _jax_partial_sums(true.reshape(-1), pred.reshape(-1))

    # Scalar finalize, exactly as written in the PyTorch module.
    # NOTE: if sum(true) <= 0 (or == 1) this produces inf/nan just like the reference.
    result_f = jnp.log(s_true)
    weight = result_f / jnp.sum(result_f)          # scalar / itself (== 1.0 generically)
    output = (-1.0 / (weight + EPS)) * s_xent / n_mean
    return output


def _reference(pred, true):
    result = jnp.sum(true)
    result_f = jnp.log(result)
    weight = result_f / jnp.sum(result_f)
    out = -jnp.sum((1.0 / (weight + EPS)) * true * jnp.log(pred + EPS), axis=1)
    return jnp.mean(out)


if __name__ == "__main__":
    key = jax.random.PRNGKey(0)
    B, C, D, H, W = 2, 4, 8, 16, 16

    k1, k2 = jax.random.split(key)
    logits = jax.random.normal(k1, (B, C, D, H, W), dtype=jnp.float32)
    pred = jax.nn.softmax(logits, axis=1)                         # predicted class probs
    labels = jax.random.randint(k2, (B, D, H, W), 0, C)
    true = jax.nn.one_hot(labels, C, axis=1, dtype=jnp.float32)   # one-hot ground truth

    loss = weighted_categorical_cross_entropy(pred, true)
    loss = jax.block_until_ready(loss)

    ref = jax.block_until_ready(_reference(pred, true))
    assert jnp.allclose(loss, ref, rtol=1e-3, atol=1e-4), (loss, ref)

    print("KERNEL_OK")
</pallas_src>

<mosaic_0001>
module attributes {stable_mosaic.version = 11 : i64} {
  func.func @_wcce_partial_kernel(%arg0: i32, %arg1: i32, %arg2: memref<128x128xf32, #tpu.memory_space<vmem>>, %arg3: memref<128x128xf32, #tpu.memory_space<vmem>>, %arg4: memref<1x2x8x128xf32, #tpu.memory_space<vmem>>) attributes {dimension_semantics = [#tpu.dimension_semantics<parallel>, #tpu.dimension_semantics<arbitrary>], iteration_bounds = array<i64: 1, 1>, scalar_prefetch = 0 : i64, scratch_operands = 0 : i64, tpu.core_type = #tpu.core_type<tc>, window_params = [{transform_indices = @transform_0, window_bounds = array<i64: 128, 128>}, {transform_indices = @transform_1, window_bounds = array<i64: 128, 128>}, {transform_indices = @transform_2, window_bounds = array<i64: 1, 2, 8, 128>}]} {
    %c0_i32 = arith.constant 0 : i32
    %0 = arith.cmpi eq, %arg1, %c0_i32 : i32
    %1 = arith.extui %0 : i1 to i32
    %c0_i32_0 = arith.constant 0 : i32
    %2 = arith.cmpi ne, %1, %c0_i32_0 : i32
    scf.if %2 {
      %cst_21 = arith.constant 0.000000e+00 : f32
      %32 = vector.broadcast %cst_21 : f32 to vector<1x2x8x128xf32>
      %c0_22 = arith.constant 0 : index
      %c0_23 = arith.constant 0 : index
      %c0_24 = arith.constant 0 : index
      %c0_25 = arith.constant 0 : index
      %33 = vector.load %arg4[%c0_22, %c0_23, %c0_24, %c0_25] : memref<1x2x8x128xf32, #tpu.memory_space<vmem>>, vector<1x2x8x128xf32>
      tpu.vector_store %arg4[%c0_22, %c0_23, %c0_24, %c0_25], %32 {strides = array<i32>} : memref<1x2x8x128xf32, #tpu.memory_space<vmem>>, vector<1x2x8x128xf32>,
    } else {
    }
    %cst = arith.constant 0.000000e+00 : f32
    %3 = vector.broadcast %cst : f32 to vector<8x128xf32>
    %c0_i32_1 = arith.constant 0 : i32
    %c128_i32 = arith.constant 128 : i32
    %4 = arith.muli %c0_i32_1, %c128_i32 : i32
    %5 = tpu.assume_multiple %4, 128 : i32
    %6 = arith.index_cast %5 : i32 to index
    %c0 = arith.constant 0 : index
    %7 = vector.load %arg3[%6, %c0] : memref<128x128xf32, #tpu.memory_space<vmem>>, vector<128x128xf32>
    %8 = arith.index_cast %5 : i32 to index
    %c0_2 = arith.constant 0 : index
    %9 = vector.load %arg2[%8, %c0_2] : memref<128x128xf32, #tpu.memory_space<vmem>>, vector<128x128xf32>
    %cst_3 = arith.constant 9.99999971E-10 : f32
    %10 = vector.broadcast %cst_3 : f32 to vector<128x128xf32>
    %11 = arith.addf %9, %10 : vector<128x128xf32>
    %12 = math.log %11 : vector<128x128xf32>
    %13 = arith.mulf %7, %12 : vector<128x128xf32>
    %14 = vector.shape_cast %7 : vector<128x128xf32> to vector<16x8x128xf32>
    %cst_4 = arith.constant dense<0.000000e+00> : vector<8x128xf32>
    %15 = vector.multi_reduction <add>, %14, %cst_4 [0] : vector<16x8x128xf32> to vector<8x128xf32>
    %16 = arith.addf %3, %15 : vector<8x128xf32>
    %17 = vector.shape_cast %13 : vector<128x128xf32> to vector<16x8x128xf32>
    %cst_5 = arith.constant dense<0.000000e+00> : vector<8x128xf32>
    %18 = vector.multi_reduction <add>, %17, %cst_5 [0] : vector<16x8x128xf32> to vector<8x128xf32>
    %19 = arith.addf %3, %18 : vector<8x128xf32>
    %c1_i32 = arith.constant 1 : i32
    %c0_6 = arith.constant 0 : index
    %c0_7 = arith.constant 0 : index
    %c0_8 = arith.constant 0 : index
    %c0_9 = arith.constant 0 : index
    %20 = vector.load %arg4[%c0_6, %c0_7, %c0_8, %c0_9] : memref<1x2x8x128xf32, #tpu.memory_space<vmem>>, vector<1x1x8x128xf32>
    %21 = vector.shape_cast %20 : vector<1x1x8x128xf32> to vector<8x128xf32>
    %22 = arith.addf %21, %16 : vector<8x128xf32>
    %c0_10 = arith.constant 0 : index
    %c0_11 = arith.constant 0 : index
    %c0_12 = arith.constant 0 : index
    %c0_13 = arith.constant 0 : index
    %23 = vector.load %arg4[%c0_10, %c0_11, %c0_12, %c0_13] : memref<1x2x8x128xf32, #tpu.memory_space<vmem>>, vector<1x1x8x128xf32>
    %24 = vector.shape_cast %23 : vector<1x1x8x128xf32> to vector<8x128xf32>
    %25 = vector.shape_cast %22 : vector<8x128xf32> to vector<1x1x8x128xf32>
    tpu.vector_store %arg4[%c0_10, %c0_11, %c0_12, %c0_13], %25 {strides = array<i32>} : memref<1x2x8x128xf32, #tpu.memory_space<vmem>>, vector<1x1x8x128xf32>,
    %c0_14 = arith.constant 0 : index
    %c1 = arith.constant 1 : index
    %c0_15 = arith.constant 0 : index
    %c0_16 = arith.constant 0 : index
    %26 = vector.load %arg4[%c0_14, %c1, %c0_15, %c0_16] : memref<1x2x8x128xf32, #tpu.memory_space<vmem>>, vector<1x1x8x128xf32>
    %27 = vector.shape_cast %26 : vector<1x1x8x128xf32> to vector<8x128xf32>
    %28 = arith.addf %27, %19 : vector<8x128xf32>
    %c0_17 = arith.constant 0 : index
    %c1_18 = arith.constant 1 : index
    %c0_19 = arith.constant 0 : index
    %c0_20 = arith.constant 0 : index
    %29 = vector.load %arg4[%c0_17, %c1_18, %c0_19, %c0_20] : memref<1x2x8x128xf32, #tpu.memory_space<vmem>>, vector<1x1x8x128xf32>
    %30 = vector.shape_cast %29 : vector<1x1x8x128xf32> to vector<8x128xf32>
    %31 = vector.shape_cast %28 : vector<8x128xf32> to vector<1x1x8x128xf32>
    tpu.vector_store %arg4[%c0_17, %c1_18, %c0_19, %c0_20], %31 {strides = array<i32>} : memref<1x2x8x128xf32, #tpu.memory_space<vmem>>, vector<1x1x8x128xf32>,
    return
  }
  func.func @transform_0(%arg0: i32, %arg1: i32) -> (i32, i32) {
    %c1_i32 = arith.constant 1 : i32
    %0 = arith.muli %arg0, %c1_i32 : i32
    %1 = arith.addi %0, %arg1 : i32
    %c0_i32 = arith.constant 0 : i32
    %c0_i32_0 = arith.constant 0 : i32
    return %1, %c0_i32 : i32, i32
  }
  func.func @transform_1(%arg0: i32, %arg1: i32) -> (i32, i32) {
    %c1_i32 = arith.constant 1 : i32
    %0 = arith.muli %arg0, %c1_i32 : i32
    %1 = arith.addi %0, %arg1 : i32
    %c0_i32 = arith.constant 0 : i32
    %c0_i32_0 = arith.constant 0 : i32
    return %1, %c0_i32 : i32, i32
  }
  func.func @transform_2(%arg0: i32, %arg1: i32) -> (i32, i32, i32, i32) {
    %c0_i32 = arith.constant 0 : i32
    %c0_i32_0 = arith.constant 0 : i32
    %c0_i32_1 = arith.constant 0 : i32
    %c0_i32_2 = arith.constant 0 : i32
    return %arg0, %c0_i32, %c0_i32_0, %c0_i32_1 : i32, i32, i32, i32
  }
}

</mosaic_0001>

<bundles_post_ra>
// kernel: tpu_custom_call.1
= control target key start
LH: loop header
LB: loop body
LE: loop exit
PB: predicated region body
PF: predicated region fallthrough
CT: control target
= control target key end

     0   :  { %7 = vsyncpa [#allocation3], 0  ;;  %s409_s0 = inlined_call_operand.hbm [shape: f32[128,128], index: 0, kind: input, shape index: {}]   ;;  %s410_s1 = inlined_call_operand.hbm [shape: f32[128,128], index: 1, kind: input, shape index: {}]   ;;  %s411_s2 = inlined_call_operand.hbm [shape: f32[1,2,8,128], index: 2, kind: output, shape index: {}]  }
   0x1   :  { %8 = vsyncpa [#allocation6], 0 }
   0x2   :  { %9 = vsyncpa [#allocation4], 0  ;;  %s315_s9 = smov [#allocation2]  }
   0x3   :  { %s19_s10 = sshll.u32 %s315_s9, 4  ;;  %s20_s10 = int_to_ptr.vmem [resolvable:$true] %s19_s10 }
   0x4   :  { %s257_s11 = scalar_lea.vmem %s20_s10, 2048  ;;  %p262_p1 = scmp.lt.s32.totalorder %s20_s10, %s20_s10 }
   0x5   :  { %p258_p0 = scmp.ne.s32.totalorder %s20_s10, %s257_s11  ;;  %p263_p2 = scmp.lt.s32.totalorder %s257_s11, %s257_s11 }
   0x7   :  { %p264_p3 = por %p263_p2, %p262_p1 }
   0x9   :  { %p265_p4 = pnand %p264_p3, %p258_p0 }
   0xb   :  { %268 = shalt.err (!%p265_p4)
}
   0xc   :  { %s316_s12 = smov 128   ;;  %s317_s13 = smov 8  }
   0xd   :  { %25 = dma.hbm_to_vmem [thread:$0]  %s409_s0, 2048, %s20_s10, [#allocation3], %s316_s12, %s316_s12, %s317_s13  }
   0xe   :  { %s318_s16 = smov [#allocation5]  }
   0xf   :  { %s35_s17 = sshll.u32 %s318_s16, 4  ;;  %s36_s17 = int_to_ptr.vmem [resolvable:$true] %s35_s17 }
  0x10   :  { %s277_s18 = scalar_lea.vmem %s36_s17, 2048  ;;  %p282_p6 = scmp.lt.s32.totalorder %s36_s17, %s36_s17 }
  0x11   :  { %p278_p5 = scmp.ne.s32.totalorder %s36_s17, %s277_s18  ;;  %p283_p7 = scmp.lt.s32.totalorder %s277_s18, %s277_s18 }
  0x13   :  { %p284_p8 = por %p283_p7, %p282_p6 }
  0x15   :  { %p285_p9 = pnand %p284_p8, %p278_p5 }
  0x17   :  { %288 = shalt.err (!%p285_p9)
}
  0x18   :  { %41 = dma.hbm_to_vmem [thread:$0]  %s410_s1, 2048, %s36_s17, [#allocation6], %s316_s12, %s316_s12, %s317_s13  }
  0x19   :  { %309 = dma.done.wait [#allocation3], 2048  }
  0x1a   :  { %310 = vsyncadd [#allocation3], 4294965248 }
  0x1b   :  { %311 = dma.done.wait [#allocation6], 2048  }
  0x1c   :  { %312 = vsyncadd [#allocation6], 4294965248  ;;  %v347_v0 = vld [vmem:[#allocation5] sm:$0xff]  ;;  %v349_v1 = vld [vmem:[#allocation5 + $0x8] sm:$0xff]  ;;  %s319_s0 = smov [#allocation7]  }
  0x1d   :  { %v154_v2 = vadd.f32 %v349_v1, %v347_v0  ;;  %v353_v3 = vld [vmem:[#allocation5 + $0x10] sm:$0xff]  ;;  %v356_v5 = vld [vmem:[#allocation5 + $0x18] sm:$0xff]  ;;  %v74_v7 = vld [vmem:[#allocation2] sm:$0xff]  ;;  %s198_s1 = sshll.u32 %s319_s0, 4  ;;  %s199_s1 = int_to_ptr.vmem [resolvable:$true] %s198_s1 }
  0x1e   :  { %v75_v8 = vld [vmem:[#allocation2 + $0x8] sm:$0xff]  ;;  %v359_v9 = vld [vmem:[#allocation5 + $0x20] sm:$0xff]  ;;  %v76_v10 = vld [vmem:[#allocation2 + $0x10] sm:$0xff]  ;;  %v90_v12 = vadd.f32 1e-09, %v74_v7  ;;  %s289_s21 = scalar_lea.vmem %s199_s1, 256  ;;  %p294_p11 = scmp.lt.s32.totalorder %s199_s1, %s199_s1 }
  0x1f   :  { %v155_v4 = vadd.f32 %v154_v2, %v353_v3  ;;  %v77_v11 = vld [vmem:[#allocation2 + $0x18] sm:$0xff]  ;;  %v78_v14 = vld [vmem:[#allocation2 + $0x20] sm:$0xff]  ;;  %v91_v15 = vadd.f32 1e-09, %v75_v8  ;;  %v362_v16 = vld [vmem:[#allocation5 + $0x28] sm:$0xff]  ;;  %p290_p10 = scmp.ne.s32.totalorder %s199_s1, %s289_s21  ;;  %p295_p12 = scmp.lt.s32.totalorder %s289_s21, %s289_s21 }
  0x20   :  { %v79_v17 = vld [vmem:[#allocation2 + $0x28] sm:$0xff]  ;;  %v92_v18 = vadd.f32 1e-09, %v76_v10  ;;  %217 = vlog2.f32 %v90_v12  ;;  %v80_v20 = vld [vmem:[#allocation2 + $0x30] sm:$0xff]  ;;  %v93_v21 = vadd.f32 1e-09, %v77_v11 }
  0x21   :  { %v156_v6 = vadd.f32 %v155_v4, %v356_v5  ;;  %219 = vlog2.f32 %v91_v15  ;;  %v365_v22 = vld [vmem:[#allocation5 + $0x30] sm:$0xff]  ;;  %v81_v23 = vld [vmem:[#allocation2 + $0x38] sm:$0xff]  ;;  %v94_v24 = vadd.f32 1e-09, %v78_v14  ;;  %v82_v26 = vld [vmem:[#allocation2 + $0x40] sm:$0xff]  ;;  %p296_p13 = por %p295_p12, %p294_p11 }
  0x22   :  { %221 = vlog2.f32 %v92_v18  ;;  %v95_v27 = vadd.f32 1e-09, %v79_v17  ;;  %v368_v28 = vld [vmem:[#allocation5 + $0x38] sm:$0xff]  ;;  %v83_v29 = vld [vmem:[#allocation2 + $0x48] sm:$0xff]  ;;  %v96_v30 = vadd.f32 1e-09, %v80_v20 }
  0x23   :  { %v157_v13 = vadd.f32 %v156_v6, %v359_v9  ;;  %223 = vlog2.f32 %v93_v21  ;;  %v97_v32 = vadd.f32 1e-09, %v81_v23  ;;  %v371_v33 = vld [vmem:[#allocation5 + $0x40] sm:$0xff]  ;;  %v84_v34 = vld [vmem:[#allocation2 + $0x50] sm:$0xff]  ;;  %v98_v35 = vadd.f32 1e-09, %v82_v26  ;;  %p297_p0 = pnand %p296_p13, %p290_p10 }
  0x24   :  { %225 = vlog2.f32 %v94_v24  ;;  %v99_v37 = vadd.f32 1e-09, %v83_v29  ;;  %v374_v38 = vld [vmem:[#allocation5 + $0x48] sm:$0xff]  ;;  %v85_v39 = vld [vmem:[#allocation2 + $0x58] sm:$0xff]  ;;  %v100_v41 = vadd.f32 1e-09, %v84_v34 }
  0x25   :  { %v158_v19 = vadd.f32 %v157_v13, %v362_v16  ;;  %227 = vlog2.f32 %v95_v27  ;;  %v377_v42 = vld [vmem:[#allocation5 + $0x50] sm:$0xff]  ;;  %v86_v43 = vld [vmem:[#allocation2 + $0x60] sm:$0xff]  ;;  %v101_v45 = vadd.f32 1e-09, %v85_v39  ;;  %v380_v46 = vld [vmem:[#allocation5 + $0x58] sm:$0xff] }
  0x26   :  { %229 = vlog2.f32 %v96_v30  ;;  %v87_v47 = vld [vmem:[#allocation2 + $0x68] sm:$0xff]  ;;  %v102_v50 = vadd.f32 1e-09, %v86_v43  ;;  %v383_v52 = vld [vmem:[#allocation5 + $0x60] sm:$0xff]  ;;  %v88_v53 = vld [vmem:[#allocation2 + $0x70] sm:$0xff] }
  0x27   :  { %v159_v25 = vadd.f32 %v158_v19, %v365_v22  ;;  %231 = vlog2.f32 %v97_v32  ;;  %v89_v57 = vld [vmem:[#allocation2 + $0x78] sm:$0xff]  ;;  %v103_v58 = vadd.f32 1e-09, %v87_v47  ;;  %v386_v60 = vld [vmem:[#allocation5 + $0x68] sm:$0xff]  ;;  %v104_v4 = vadd.f32 1e-09, %v88_v53 }
  0x28   :  { %233 = vlog2.f32 %v98_v35  ;;  %v72_v7 = vld [vmem:[#allocation5 + $0x70] sm:$0xff]  ;;  %v105_v8 = vadd.f32 1e-09, %v89_v57  ;;  %v73_v17 = vld [vmem:[#allocation5 + $0x78] sm:$0xff] }
  0x29   :  { %v160_v31 = vadd.f32 %v159_v25, %v368_v28  ;;  %235 = vlog2.f32 %v99_v37 }
  0x2a   :  { %237 = vlog2.f32 %v100_v41 }
  0x2b   :  { %v161_v36 = vadd.f32 %v160_v31, %v371_v33  ;;  %239 = vlog2.f32 %v101_v45 }
  0x2c   :  { %241 = vlog2.f32 %v102_v50 }
  0x2d   :  { %v162_v40 = vadd.f32 %v161_v36, %v374_v38  ;;  %v218_v48 = vpop.eup %217  ;;  %243 = vlog2.f32 %v103_v58 }
  0x2e   :  { %v220_v51 = vpop.eup %219  ;;  %v107_v54 = vmul.f32 0.6931472, %v218_v48  ;;  %245 = vlog2.f32 %v104_v4 }
  0x2f   :  { %v163_v44 = vadd.f32 %v162_v40, %v377_v42  ;;  %v222_v55 = vpop.eup %221  ;;  %v109_v59 = vmul.f32 0.6931472, %v220_v51  ;;  %247 = vlog2.f32 %v105_v8 }
  0x30   :  { %v111_v61 = vmul.f32 0.6931472, %v222_v55  ;;  %v138_v62 = vmul.f32 %v107_v54, %v347_v0  ;;  %v224_v63 = vpop.eup %223 }
  0x31   :  { %v164_v49 = vadd.f32 %v163_v44, %v380_v46  ;;  %v139_v6 = vmul.f32 %v109_v59, %v349_v1  ;;  %v113_v10 = vmul.f32 0.6931472, %v224_v63  ;;  %v226_v12 = vpop.eup %225 }
  0x32   :  { %v140_v11 = vmul.f32 %v111_v61, %v353_v3  ;;  %v228_v15 = vpop.eup %227  ;;  %v115_v18 = vmul.f32 0.6931472, %v226_v12 }
  0x33   :  { %v165_v56 = vadd.f32 %v164_v49, %v383_v52  ;;  %v170_v14 = vadd.f32 %v139_v6, %v138_v62  ;;  %v141_v0 = vmul.f32 %v113_v10, %v356_v5  ;;  %v230_v19 = vpop.eup %229  ;;  %v117_v21 = vmul.f32 0.6931472, %v228_v15 }
  0x34   :  { %v232_v1 = vpop.eup %231  ;;  %v119_v24 = vmul.f32 0.6931472, %v230_v19  ;;  %v142_v25 = vmul.f32 %v115_v18, %v359_v9 }
  0x35   :  { %v166_v2 = vadd.f32 %v165_v56, %v386_v60  ;;  %v171_v23 = vadd.f32 %v170_v14, %v140_v11  ;;  %v234_v3 = vpop.eup %233  ;;  %v121_v26 = vmul.f32 0.6931472, %v232_v1  ;;  %v143_v27 = vmul.f32 %v117_v21, %v362_v16 }
  0x36   :  { %v236_v30 = vpop.eup %235  ;;  %v123_v31 = vmul.f32 0.6931472, %v234_v3  ;;  %v144_v5 = vmul.f32 %v119_v24, %v365_v22 }
  0x37   :  { %v167_v13 = vadd.f32 %v166_v2, %v72_v7  ;;  %v172_v29 = vadd.f32 %v171_v23, %v141_v0  ;;  %v238_v34 = vpop.eup %237  ;;  %v125_v35 = vmul.f32 0.6931472, %v236_v30  ;;  %v145_v36 = vmul.f32 %v121_v26, %v368_v28 }
  0x38   :  { %v240_v39 = vpop.eup %239  ;;  %v127_v40 = vmul.f32 0.6931472, %v238_v34  ;;  %v146_v9 = vmul.f32 %v123_v31, %v371_v33 }
  0x39   :  { %v168_v20 = vadd.f32 %v167_v13, %v73_v17  ;;  %v173_v32 = vadd.f32 %v172_v29, %v142_v25  ;;  %v242_v43 = vpop.eup %241  ;;  %v129_v44 = vmul.f32 0.6931472, %v240_v39  ;;  %v147_v16 = vmul.f32 %v125_v35, %v374_v38 }
  0x3a   :  { %v244_v47 = vpop.eup %243  ;;  %v131_v48 = vmul.f32 0.6931472, %v242_v43  ;;  %v148_v22 = vmul.f32 %v127_v40, %v377_v42 }
  0x3b   :  { %188 = vst [vmem:[#allocation7] sm:$0xff] %v168_v20  ;;  %v174_v37 = vadd.f32 %v173_v32, %v143_v27  ;;  %v246_v50 = vpop.eup %245  ;;  %v133_v53 = vmul.f32 0.6931472, %v244_v47  ;;  %v149_v28 = vmul.f32 %v129_v44, %v380_v46 }
  0x3c   :  { %v248_v51 = vpop.eup %247  ;;  %v135_v55 = vmul.f32 0.6931472, %v246_v50  ;;  %v150_v33 = vmul.f32 %v131_v48, %v383_v52 }
  0x3d   :  { %v175_v41 = vadd.f32 %v174_v37, %v144_v5  ;;  %v137_v57 = vmul.f32 0.6931472, %v248_v51  ;;  %v151_v58 = vmul.f32 %v133_v53, %v386_v60 }
  0x3e   :  { %v152_v59 = vmul.f32 %v135_v55, %v72_v7 }
  0x3f   :  { %v176_v45 = vadd.f32 %v175_v41, %v145_v36  ;;  %v153_v62 = vmul.f32 %v137_v57, %v73_v17 }
  0x41   :  { %v177_v49 = vadd.f32 %v176_v45, %v146_v9 }
  0x43   :  { %v178_v54 = vadd.f32 %v177_v49, %v147_v16 }
  0x45   :  { %v179_v56 = vadd.f32 %v178_v54, %v148_v22 }
  0x47   :  { %v180_v38 = vadd.f32 %v179_v56, %v149_v28 }
  0x49   :  { %v181_v61 = vadd.f32 %v180_v38, %v150_v33 }
  0x4b   :  { %v182_v63 = vadd.f32 %v181_v61, %v151_v58 }
  0x4d   :  { %v183_v42 = vadd.f32 %v182_v63, %v152_v59 }
  0x4f   :  { %v184_v2 = vadd.f32 %v183_v42, %v153_v62 }
  0x51   :  { %192 = vst [vmem:[#allocation7 + $0x8] sm:$0xff] %v184_v2 }
  0x52   :  { %300 = shalt.err (!%p297_p0)
}
  0x53   :  { %204 = dma.vmem_to_hbm [thread:$0]  %s199_s1, 256, %s411_s2, [#allocation4], %s316_s12, %s316_s12, %s317_s13  }
  0x54   :  { %313 = dma.done.wait [#allocation4], 256  }
  0x55   :  { %314 = vsyncadd [#allocation4], 4294967040 }
  0x56   :  { %208 = vsyncpa [#allocation3], 1 }
  0x57   :  { %209 = vsyncpa [#allocation6], 1 }
  0x58   :  { %210 = vsyncpa [#allocation4], 1 }

</bundles_post_ra>
